<compile_context>
chip_gen: v6e
topology: v6e:2x2x1
jax: 0.10.0
libtpu: 0.0.40
codegen_flags: <defaults>
</compile_context>

<pallas_src>
import functools

import jax
import jax.numpy as jnp
from jax.experimental import pallas as pl
from jax.experimental.pallas import tpu as pltpu


# ---------------------------------------------------------------------------
# Kernel
# ---------------------------------------------------------------------------
def _shift_lanes(x, shift, use_xlu_roll):
    """roll(x, shift, axis=-1).  XLU rotate when the lane count is 128-aligned,
    generic concat fallback otherwise (small / fallback tiles)."""
    if shift == 0:
        return x
    if use_xlu_roll:
        return pltpu.roll(x, shift=shift, axis=1)
    return jnp.concatenate([x[:, -shift:], x[:, :-shift]], axis=1)


def _conv1d_block_kernel(x_ref, w_ref, b_ref, g_ref, beta_ref, mask_ref,
                         seg_ref, segt_ref, grp2_ref, grpt2_ref, o_ref,
                         *, n_groups, eps, K, pad, cnt):
    # x_ref    : (C_in, N)         batch-fused input slab, N = B_t * T
    # w_ref    : (K, C_out, C_in)  per-tap weights
    # b_ref    : (C_out, 1)        conv bias
    # g_ref    : (C_out, 1)        GroupNorm gamma
    # beta_ref : (C_out, 1)        GroupNorm beta
    # mask_ref : (K, 1, N)         per-tap padding / batch-boundary lane masks
    # seg_ref  : (N, B_t)          lane -> batch one-hot
    # segt_ref : (B_t, N)          batch -> lane one-hot (seg transposed)
    # grp2_ref : (2G, 2C_out)      blockdiag(group one-hot, group one-hot)
    # grpt2_ref: (2C_out, 2G)      blockdiag(group one-hot^T, group one-hot^T)
    # o_ref    : (C_out, N)        lane-dense output slab
    C_out = o_ref.shape[0]
    N = x_ref.shape[1]
    aligned = (N % 128 == 0)

    x = x_ref[...]

    # ---- Conv1d: K shifted-slab matmuls, f32 accumulation ------------------
    # No im2col materialization: per tap an XLU lane rotate + precomputed mask,
    # then one cheap MXU push over the full N lanes.
    y = None
    for k in range(K):
        xk = _shift_lanes(x, (pad - k) % N, aligned)
        if k != pad:                       # centre tap never crosses an edge
            xk = xk * mask_ref[k]
        tap = jnp.dot(w_ref[k], xk, preferred_element_type=jnp.float32)
        y = tap if y is None else y + tap
    y = y + b_ref[...].astype(jnp.float32)                       # (C_out, N)

    # ---- GroupNorm (per sample, per group) via stacked matmul reductions ---
    inv_cnt = 1.0 / float(cnt)
    ys = jnp.concatenate([y, y * y], axis=0)                     # (2C_out, N), 8-aligned stack
    s12 = jnp.dot(ys, seg_ref[...], preferred_element_type=jnp.float32)      # (2C_out, B_t)
    gs12 = jnp.dot(grp2_ref[...], s12, preferred_element_type=jnp.float32)   # (2G, B_t)
    mean = gs12[:n_groups] * inv_cnt
    var = jnp.maximum(gs12[n_groups:] * inv_cnt - mean * mean, 0.0)          # clamp cancellation
    inv = jax.lax.rsqrt(var + eps)                               # (G, B_t)

    im = jnp.concatenate([inv, mean], axis=0)                    # (2G, B_t)
    im_cb = jnp.dot(grpt2_ref[...], im, preferred_element_type=jnp.float32)  # (2C_out, B_t)
    gamma = g_ref[...].astype(jnp.float32)
    beta = beta_ref[...].astype(jnp.float32)
    scale_cb = gamma * im_cb[:C_out]                             # (C_out, B_t)
    shift_cb = beta - im_cb[C_out:] * scale_cb
    ss_cb = jnp.concatenate([scale_cb, shift_cb], axis=0)        # (2C_out, B_t)
    ss = jnp.dot(ss_cb, segt_ref[...], preferred_element_type=jnp.float32)   # (2C_out, N)
    yn = y * ss[:C_out] + ss[C_out:]

    # ---- Mish with a single EUP exp: x * e(e+2)/(e(e+2)+2) -----------------
    # Clamp the exponent so e**2 never overflows; for yn >= 20 the ratio is 1.0
    # in f32 so mish(yn) == yn.
    e = jnp.exp(jnp.minimum(yn, 20.0))
    p = e * (e + 2.0)
    out = yn * p * pl.reciprocal(p + 2.0, approx=False)
    o_ref[...] = out.astype(o_ref.dtype)


# ---------------------------------------------------------------------------
# Tiling / VMEM budgeting
# ---------------------------------------------------------------------------
def _vmem_limit_bytes():
    try:
        phys = int(pltpu.get_tpu_info().vmem_capacity_bytes)
    except Exception:
        phys = 64 << 20            # conservative (v7x per-TC VMEM)
    # 48 MiB on v7x (64 MiB physical), ~96-100 MiB on v5e/v6e (128 MiB physical).
    return min((phys * 3) // 4, 100 << 20)


def _vmem_bytes_estimate(B_t, T, T_out, C_in, C_out, K, itemsize):
    n_in, n_out = B_t * T, B_t * T_out
    # Pipelined input/output blocks (double-buffered by default).
    blk = 2 * itemsize * (C_in * n_in + K * n_in + 2 * B_t * n_in)
    blk += 2 * itemsize * C_out * n_out
    # f32 in-kernel live values: x slab + shifted tap, y, stacked y/y^2,
    # scale/shift slab, Mish temporaries.
    live = 4 * (2 * C_in * n_in + 8 * C_out * n_out)
    return blk + live + (2 << 20)      # weights / one-hots / headroom


def _choose_batch_tile(B, T, T_out, C_in, C_out, K, itemsize, vmem_budget):
    """Batch elements fused per grid step.

    Prefer lane-dense blocks (B_t*T_out a multiple of 128), >= ~2048 lanes to
    amortize the ~0.35us per-step overhead, that fit the VMEM budget, while
    keeping >= 2 grid steps (v7x megacore + double buffering) when possible.
    """
    target_lanes = 2048
    cands = [d for d in range(1, B + 1)
             if B % d == 0
             and (d * T_out) % 128 == 0 and (d * T) % 128 == 0
             and _vmem_bytes_estimate(d, T, T_out, C_in, C_out, K, itemsize)
             <= vmem_budget]
    if cands:
        multi = [d for d in cands if B // d >= 2] or cands
        big = [d for d in multi if d * T_out >= target_lanes]
        return min(big) if big else max(multi)
    # Fallback: whole batch in one step (block == full array is always legal).
    # TODO(synk): also tile the time axis when B*T_out has no 128-aligned
    # divisor or a whole-batch step would exceed the VMEM budget (v7x 64 MiB).
    return B


def _block_diag2(m):
    z = jnp.zeros_like(m)
    top = jnp.concatenate([m, z], axis=1)
    bot = jnp.concatenate([z, m], axis=1)
    return jnp.concatenate([top, bot], axis=0)


# ---------------------------------------------------------------------------
# Wrapper
# ---------------------------------------------------------------------------
def conv1d_block(x, weight, bias, gamma, beta, *, n_groups=8, eps=1e-5):
    B, C_in, T = x.shape
    C_out, C_in_w, K = weight.shape
    assert C_in_w == C_in
    assert C_out % n_groups == 0
    if K % 2 == 0:
        # TODO(synk): even kernel_size gives T_out = T + 1, which breaks the
        # uniform lane shift used by the conv; not needed by the module's usage.
        raise NotImplementedError("conv1d_block: even kernel_size not supported")
    pad = K // 2
    T_out = T                            # odd K, padding = K//2, stride 1
    cpg = C_out // n_groups

    vmem_limit = _vmem_limit_bytes()
    B_t = _choose_batch_tile(B, T, T_out, C_in, C_out, K,
                             jnp.dtype(x.dtype).itemsize, int(vmem_limit * 0.7))
    n_blocks = B // B_t
    N = B_t * T

    f32 = jnp.float32
    # ---- layout plumbing + hoisted constants (wrapper side, once) ----------
    x2 = jnp.transpose(x, (1, 0, 2)).reshape(C_in, B * T)        # (C_in, B*T), lane-fused
    w3 = jnp.transpose(weight, (2, 0, 1))                        # (K, C_out, C_in)
    b2 = bias.reshape(C_out, 1)
    g2 = gamma.reshape(C_out, 1)
    be2 = beta.reshape(C_out, 1)

    pos = jnp.arange(N, dtype=jnp.int32) % T
    mask = jnp.stack(
        [((pos + (k - pad) >= 0) & (pos + (k - pad) < T)) for k in range(K)]
    ).astype(x.dtype).reshape(K, 1, N)                           # per-tap edge masks
    seg = (jnp.arange(N, dtype=jnp.int32)[:, None] // T
           == jnp.arange(B_t, dtype=jnp.int32)[None, :]).astype(f32)   # (N, B_t)
    seg_t = jnp.transpose(seg)                                           # (B_t, N)
    grp = (jnp.arange(C_out, dtype=jnp.int32)[None, :] // cpg
           == jnp.arange(n_groups, dtype=jnp.int32)[:, None]).astype(f32)  # (G, C_out)
    grp2 = _block_diag2(grp)                                     # (2G, 2C_out)
    grpt2 = _block_diag2(jnp.transpose(grp))                     # (2C_out, 2G)

    kernel = functools.partial(_conv1d_block_kernel, n_groups=n_groups,
                               eps=eps, K=K, pad=pad, cnt=cpg * T_out)

    out2d = pl.pallas_call(
        kernel,
        out_shape=jax.ShapeDtypeStruct((C_out, B * T_out), x.dtype),
        grid_spec=pltpu.PrefetchScalarGridSpec(
            num_scalar_prefetch=0,
            grid=(n_blocks,),
            in_specs=[
                pl.BlockSpec((C_in, N), lambda i: (0, i)),              # x slab
                pl.BlockSpec((K, C_out, C_in), lambda i: (0, 0, 0)),    # weights
                pl.BlockSpec((C_out, 1), lambda i: (0, 0)),             # bias
                pl.BlockSpec((C_out, 1), lambda i: (0, 0)),             # gamma
                pl.BlockSpec((C_out, 1), lambda i: (0, 0)),             # beta
                pl.BlockSpec((K, 1, N), lambda i: (0, 0, 0)),           # tap masks
                pl.BlockSpec((N, B_t), lambda i: (0, 0)),               # seg
                pl.BlockSpec((B_t, N), lambda i: (0, 0)),               # seg^T
                pl.BlockSpec((2 * n_groups, 2 * C_out), lambda i: (0, 0)),
                pl.BlockSpec((2 * C_out, 2 * n_groups), lambda i: (0, 0)),
            ],
            out_specs=pl.BlockSpec((C_out, B_t * T_out), lambda i: (0, i)),
        ),
        compiler_params=pltpu.CompilerParams(
            dimension_semantics=("parallel",),
            vmem_limit_bytes=int(vmem_limit)),
    )(x2, w3, b2, g2, be2, mask, seg, seg_t, grp2, grpt2)

    # (C_out, B*T_out) -> (B, C_out, T_out): layout plumbing only.
    return jnp.transpose(out2d.reshape(C_out, B, T_out), (1, 0, 2))


# ---------------------------------------------------------------------------
# Pure-JAX reference and smoke test
# ---------------------------------------------------------------------------
def _reference(x, weight, bias, gamma, beta, n_groups=8, eps=1e-5):
    K = weight.shape[2]
    pad = K // 2
    y = jax.lax.conv_general_dilated(
        x, weight, window_strides=(1,), padding=[(pad, pad)],
        dimension_numbers=("NCH", "OIH", "NCH"))
    y = y + bias[None, :, None]
    B, C, T = y.shape
    yg = y.reshape(B, n_groups, -1)
    mean = jnp.mean(yg, axis=-1, keepdims=True)
    var = jnp.mean((yg - mean) ** 2, axis=-1, keepdims=True)
    yn = ((yg - mean) / jnp.sqrt(var + eps)).reshape(B, C, T)
    yn = yn * gamma[None, :, None] + beta[None, :, None]
    return yn * jnp.tanh(jax.nn.softplus(yn))


if __name__ == "__main__":
    # Small shapes consistent with the module: batch=2, inp_channels=4,
    # out_channels=16 (divisible by n_groups=8), horizon=16, kernel_size=5.
    B, C_IN, C_OUT, T, K, N_GROUPS = 2, 4, 16, 16, 5, 8

    key = jax.random.PRNGKey(0)
    kx, kw, kb, kg, kbe = jax.random.split(key, 5)

    x = jax.random.normal(kx, (B, C_IN, T), dtype=jnp.float32)
    weight = 0.1 * jax.random.normal(kw, (C_OUT, C_IN, K), dtype=jnp.float32)
    bias = 0.1 * jax.random.normal(kb, (C_OUT,), dtype=jnp.float32)
    gamma = 1.0 + 0.1 * jax.random.normal(kg, (C_OUT,), dtype=jnp.float32)
    beta = 0.1 * jax.random.normal(kbe, (C_OUT,), dtype=jnp.float32)

    out = conv1d_block(x, weight, bias, gamma, beta, n_groups=N_GROUPS)
    out = jax.block_until_ready(out)

    ref = _reference(x, weight, bias, gamma, beta, n_groups=N_GROUPS)
    assert out.shape == (B, C_OUT, T), out.shape
    assert jnp.allclose(out, ref, rtol=2e-3, atol=2e-3), (
        float(jnp.max(jnp.abs(out - ref))))

    print("KERNEL_OK")
</pallas_src>

<mosaic_0001>
module attributes {stable_mosaic.version = 11 : i64} {
  func.func @_conv1d_block_kernel(%arg0: i32, %arg1: memref<4x32xf32, #tpu.memory_space<vmem>>, %arg2: memref<5x16x4xf32, #tpu.memory_space<vmem>>, %arg3: memref<16x1xf32, #tpu.memory_space<vmem>>, %arg4: memref<16x1xf32, #tpu.memory_space<vmem>>, %arg5: memref<16x1xf32, #tpu.memory_space<vmem>>, %arg6: memref<5x1x32xf32, #tpu.memory_space<vmem>>, %arg7: memref<32x2xf32, #tpu.memory_space<vmem>>, %arg8: memref<2x32xf32, #tpu.memory_space<vmem>>, %arg9: memref<16x32xf32, #tpu.memory_space<vmem>>, %arg10: memref<32x16xf32, #tpu.memory_space<vmem>>, %arg11: memref<16x32xf32, #tpu.memory_space<vmem>>) attributes {dimension_semantics = [#tpu.dimension_semantics<parallel>], iteration_bounds = array<i64: 1>, scalar_prefetch = 0 : i64, scratch_operands = 0 : i64, tpu.core_type = #tpu.core_type<tc>, window_params = [{transform_indices = @transform_0, window_bounds = array<i64: 4, 32>}, {pipeline_mode = #tpu.pipeline_mode<synchronous>, transform_indices = @transform_1, window_bounds = array<i64: 5, 16, 4>}, {pipeline_mode = #tpu.pipeline_mode<synchronous>, transform_indices = @transform_2, window_bounds = array<i64: 16, 1>}, {pipeline_mode = #tpu.pipeline_mode<synchronous>, transform_indices = @transform_3, window_bounds = array<i64: 16, 1>}, {pipeline_mode = #tpu.pipeline_mode<synchronous>, transform_indices = @transform_4, window_bounds = array<i64: 16, 1>}, {pipeline_mode = #tpu.pipeline_mode<synchronous>, transform_indices = @transform_5, window_bounds = array<i64: 5, 1, 32>}, {pipeline_mode = #tpu.pipeline_mode<synchronous>, transform_indices = @transform_6, window_bounds = array<i64: 32, 2>}, {pipeline_mode = #tpu.pipeline_mode<synchronous>, transform_indices = @transform_7, window_bounds = array<i64: 2, 32>}, {pipeline_mode = #tpu.pipeline_mode<synchronous>, transform_indices = @transform_8, window_bounds = array<i64: 16, 32>}, {pipeline_mode = #tpu.pipeline_mode<synchronous>, transform_indices = @transform_9, window_bounds = array<i64: 32, 16>}, {transform_indices = @transform_10, window_bounds = array<i64: 16, 32>}]} {
    %c0 = arith.constant 0 : index
    %c0_0 = arith.constant 0 : index
    %0 = vector.load %arg1[%c0, %c0_0] : memref<4x32xf32, #tpu.memory_space<vmem>>, vector<4x32xf32>
    %1 = vector.extract_strided_slice %0 {offsets = [0, 30], sizes = [4, 2], strides = [1, 1]} : vector<4x32xf32> to vector<4x2xf32>
    %2 = vector.extract_strided_slice %0 {offsets = [0, 0], sizes = [4, 30], strides = [1, 1]} : vector<4x32xf32> to vector<4x30xf32>
    %3 = tpu.concatenate %1, %2 in 1 : vector<4x2xf32>, vector<4x30xf32> -> vector<4x32xf32>
    %c0_1 = arith.constant 0 : index
    %c0_2 = arith.constant 0 : index
    %c0_3 = arith.constant 0 : index
    %4 = vector.load %arg6[%c0_1, %c0_2, %c0_3] : memref<5x1x32xf32, #tpu.memory_space<vmem>>, vector<1x1x32xf32>
    %5 = vector.shape_cast %4 : vector<1x1x32xf32> to vector<1x32xf32>
    %6 = vector.broadcast %5 : vector<1x32xf32> to vector<4x32xf32>
    %7 = arith.mulf %3, %6 : vector<4x32xf32>
    %c0_4 = arith.constant 0 : index
    %c0_5 = arith.constant 0 : index
    %c0_6 = arith.constant 0 : index
    %8 = vector.load %arg2[%c0_4, %c0_5, %c0_6] : memref<5x16x4xf32, #tpu.memory_space<vmem>>, vector<1x16x4xf32>
    %9 = vector.shape_cast %8 : vector<1x16x4xf32> to vector<16x4xf32>
    %cst = arith.constant dense<0.000000e+00> : vector<16x32xf32>
    %10 = tpu.matmul %9, %7, %cst {dimension_numbers = #tpu.dot_dimension_numbers<[1], [0], [0], [1], [0, 0, 1, 1], [], []>} : vector<16x4xf32>, vector<4x32xf32>, vector<16x32xf32> -> vector<16x32xf32>
    %11 = vector.extract_strided_slice %0 {offsets = [0, 31], sizes = [4, 1], strides = [1, 1]} : vector<4x32xf32> to vector<4x1xf32>
    %12 = vector.extract_strided_slice %0 {offsets = [0, 0], sizes = [4, 31], strides = [1, 1]} : vector<4x32xf32> to vector<4x31xf32>
    %13 = tpu.concatenate %11, %12 in 1 : vector<4x1xf32>, vector<4x31xf32> -> vector<4x32xf32>
    %c1 = arith.constant 1 : index
    %c0_7 = arith.constant 0 : index
    %c0_8 = arith.constant 0 : index
    %14 = vector.load %arg6[%c1, %c0_7, %c0_8] : memref<5x1x32xf32, #tpu.memory_space<vmem>>, vector<1x1x32xf32>
    %15 = vector.shape_cast %14 : vector<1x1x32xf32> to vector<1x32xf32>
    %16 = vector.broadcast %15 : vector<1x32xf32> to vector<4x32xf32>
    %17 = arith.mulf %13, %16 : vector<4x32xf32>
    %c1_9 = arith.constant 1 : index
    %c0_10 = arith.constant 0 : index
    %c0_11 = arith.constant 0 : index
    %18 = vector.load %arg2[%c1_9, %c0_10, %c0_11] : memref<5x16x4xf32, #tpu.memory_space<vmem>>, vector<1x16x4xf32>
    %19 = vector.shape_cast %18 : vector<1x16x4xf32> to vector<16x4xf32>
    %cst_12 = arith.constant dense<0.000000e+00> : vector<16x32xf32>
    %20 = tpu.matmul %19, %17, %cst_12 {dimension_numbers = #tpu.dot_dimension_numbers<[1], [0], [0], [1], [0, 0, 1, 1], [], []>} : vector<16x4xf32>, vector<4x32xf32>, vector<16x32xf32> -> vector<16x32xf32>
    %21 = arith.addf %10, %20 : vector<16x32xf32>
    %c2 = arith.constant 2 : index
    %c0_13 = arith.constant 0 : index
    %c0_14 = arith.constant 0 : index
    %22 = vector.load %arg2[%c2, %c0_13, %c0_14] : memref<5x16x4xf32, #tpu.memory_space<vmem>>, vector<1x16x4xf32>
    %23 = vector.shape_cast %22 : vector<1x16x4xf32> to vector<16x4xf32>
    %cst_15 = arith.constant dense<0.000000e+00> : vector<16x32xf32>
    %24 = tpu.matmul %23, %0, %cst_15 {dimension_numbers = #tpu.dot_dimension_numbers<[1], [0], [0], [1], [0, 0, 1, 1], [], []>} : vector<16x4xf32>, vector<4x32xf32>, vector<16x32xf32> -> vector<16x32xf32>
    %25 = arith.addf %21, %24 : vector<16x32xf32>
    %26 = vector.extract_strided_slice %0 {offsets = [0, 1], sizes = [4, 31], strides = [1, 1]} : vector<4x32xf32> to vector<4x31xf32>
    %27 = vector.extract_strided_slice %0 {offsets = [0, 0], sizes = [4, 1], strides = [1, 1]} : vector<4x32xf32> to vector<4x1xf32>
    %28 = tpu.concatenate %26, %27 in 1 : vector<4x31xf32>, vector<4x1xf32> -> vector<4x32xf32>
    %c3 = arith.constant 3 : index
    %c0_16 = arith.constant 0 : index
    %c0_17 = arith.constant 0 : index
    %29 = vector.load %arg6[%c3, %c0_16, %c0_17] : memref<5x1x32xf32, #tpu.memory_space<vmem>>, vector<1x1x32xf32>
    %30 = vector.shape_cast %29 : vector<1x1x32xf32> to vector<1x32xf32>
    %31 = vector.broadcast %30 : vector<1x32xf32> to vector<4x32xf32>
    %32 = arith.mulf %28, %31 : vector<4x32xf32>
    %c3_18 = arith.constant 3 : index
    %c0_19 = arith.constant 0 : index
    %c0_20 = arith.constant 0 : index
    %33 = vector.load %arg2[%c3_18, %c0_19, %c0_20] : memref<5x16x4xf32, #tpu.memory_space<vmem>>, vector<1x16x4xf32>
    %34 = vector.shape_cast %33 : vector<1x16x4xf32> to vector<16x4xf32>
    %cst_21 = arith.constant dense<0.000000e+00> : vector<16x32xf32>
    %35 = tpu.matmul %34, %32, %cst_21 {dimension_numbers = #tpu.dot_dimension_numbers<[1], [0], [0], [1], [0, 0, 1, 1], [], []>} : vector<16x4xf32>, vector<4x32xf32>, vector<16x32xf32> -> vector<16x32xf32>
    %36 = arith.addf %25, %35 : vector<16x32xf32>
    %37 = vector.extract_strided_slice %0 {offsets = [0, 2], sizes = [4, 30], strides = [1, 1]} : vector<4x32xf32> to vector<4x30xf32>
    %38 = vector.extract_strided_slice %0 {offsets = [0, 0], sizes = [4, 2], strides = [1, 1]} : vector<4x32xf32> to vector<4x2xf32>
    %39 = tpu.concatenate %37, %38 in 1 : vector<4x30xf32>, vector<4x2xf32> -> vector<4x32xf32>
    %c4 = arith.constant 4 : index
    %c0_22 = arith.constant 0 : index
    %c0_23 = arith.constant 0 : index
    %40 = vector.load %arg6[%c4, %c0_22, %c0_23] : memref<5x1x32xf32, #tpu.memory_space<vmem>>, vector<1x1x32xf32>
    %41 = vector.shape_cast %40 : vector<1x1x32xf32> to vector<1x32xf32>
    %42 = vector.broadcast %41 : vector<1x32xf32> to vector<4x32xf32>
    %43 = arith.mulf %39, %42 : vector<4x32xf32>
    %c4_24 = arith.constant 4 : index
    %c0_25 = arith.constant 0 : index
    %c0_26 = arith.constant 0 : index
    %44 = vector.load %arg2[%c4_24, %c0_25, %c0_26] : memref<5x16x4xf32, #tpu.memory_space<vmem>>, vector<1x16x4xf32>
    %45 = vector.shape_cast %44 : vector<1x16x4xf32> to vector<16x4xf32>
    %cst_27 = arith.constant dense<0.000000e+00> : vector<16x32xf32>
    %46 = tpu.matmul %45, %43, %cst_27 {dimension_numbers = #tpu.dot_dimension_numbers<[1], [0], [0], [1], [0, 0, 1, 1], [], []>} : vector<16x4xf32>, vector<4x32xf32>, vector<16x32xf32> -> vector<16x32xf32>
    %47 = arith.addf %36, %46 : vector<16x32xf32>
    %c0_28 = arith.constant 0 : index
    %c0_29 = arith.constant 0 : index
    %48 = vector.load %arg3[%c0_28, %c0_29] : memref<16x1xf32, #tpu.memory_space<vmem>>, vector<16x1xf32>
    %49 = vector.broadcast %48 : vector<16x1xf32> to vector<16x32xf32>
    %50 = arith.addf %47, %49 : vector<16x32xf32>
    %51 = arith.mulf %50, %50 : vector<16x32xf32>
    %52 = tpu.concatenate %50, %51 in 0 : vector<16x32xf32>, vector<16x32xf32> -> vector<32x32xf32>
    %c0_30 = arith.constant 0 : index
    %c0_31 = arith.constant 0 : index
    %53 = vector.load %arg7[%c0_30, %c0_31] : memref<32x2xf32, #tpu.memory_space<vmem>>, vector<32x2xf32>
    %cst_32 = arith.constant dense<0.000000e+00> : vector<32x2xf32>
    %54 = tpu.matmul %52, %53, %cst_32 {dimension_numbers = #tpu.dot_dimension_numbers<[1], [0], [0], [1], [0, 0, 1, 1], [], []>} : vector<32x32xf32>, vector<32x2xf32>, vector<32x2xf32> -> vector<32x2xf32>
    %c0_33 = arith.constant 0 : index
    %c0_34 = arith.constant 0 : index
    %55 = vector.load %arg9[%c0_33, %c0_34] : memref<16x32xf32, #tpu.memory_space<vmem>>, vector<16x32xf32>
    %cst_35 = arith.constant dense<0.000000e+00> : vector<16x2xf32>
    %56 = tpu.matmul %55, %54, %cst_35 {dimension_numbers = #tpu.dot_dimension_numbers<[1], [0], [0], [1], [0, 0, 1, 1], [], []>} : vector<16x32xf32>, vector<32x2xf32>, vector<16x2xf32> -> vector<16x2xf32>
    %57 = vector.extract_strided_slice %56 {offsets = [0, 0], sizes = [8, 2], strides = [1, 1]} : vector<16x2xf32> to vector<8x2xf32>
    %cst_36 = arith.constant 3.125000e-02 : f32
    %58 = vector.broadcast %cst_36 : f32 to vector<8x2xf32>
    %59 = arith.mulf %57, %58 : vector<8x2xf32>
    %60 = vector.extract_strided_slice %56 {offsets = [8, 0], sizes = [8, 2], strides = [1, 1]} : vector<16x2xf32> to vector<8x2xf32>
    %cst_37 = arith.constant 3.125000e-02 : f32
    %61 = vector.broadcast %cst_37 : f32 to vector<8x2xf32>
    %62 = arith.mulf %60, %61 : vector<8x2xf32>
    %63 = arith.mulf %59, %59 : vector<8x2xf32>
    %64 = arith.subf %62, %63 : vector<8x2xf32>
    %cst_38 = arith.constant 0.000000e+00 : f32
    %65 = vector.broadcast %cst_38 : f32 to vector<8x2xf32>
    %66 = arith.maximumf %64, %65 : vector<8x2xf32>
    %cst_39 = arith.constant 9.99999974E-6 : f32
    %67 = vector.broadcast %cst_39 : f32 to vector<8x2xf32>
    %68 = arith.addf %66, %67 : vector<8x2xf32>
    %69 = math.rsqrt %68 : vector<8x2xf32>
    %70 = tpu.concatenate %69, %59 in 0 : vector<8x2xf32>, vector<8x2xf32> -> vector<16x2xf32>
    %c0_40 = arith.constant 0 : index
    %c0_41 = arith.constant 0 : index
    %71 = vector.load %arg10[%c0_40, %c0_41] : memref<32x16xf32, #tpu.memory_space<vmem>>, vector<32x16xf32>
    %cst_42 = arith.constant dense<0.000000e+00> : vector<32x2xf32>
    %72 = tpu.matmul %71, %70, %cst_42 {dimension_numbers = #tpu.dot_dimension_numbers<[1], [0], [0], [1], [0, 0, 1, 1], [], []>} : vector<32x16xf32>, vector<16x2xf32>, vector<32x2xf32> -> vector<32x2xf32>
    %c0_43 = arith.constant 0 : index
    %c0_44 = arith.constant 0 : index
    %73 = vector.load %arg4[%c0_43, %c0_44] : memref<16x1xf32, #tpu.memory_space<vmem>>, vector<16x1xf32>
    %c0_45 = arith.constant 0 : index
    %c0_46 = arith.constant 0 : index
    %74 = vector.load %arg5[%c0_45, %c0_46] : memref<16x1xf32, #tpu.memory_space<vmem>>, vector<16x1xf32>
    %75 = vector.extract_strided_slice %72 {offsets = [0, 0], sizes = [16, 2], strides = [1, 1]} : vector<32x2xf32> to vector<16x2xf32>
    %76 = vector.broadcast %73 : vector<16x1xf32> to vector<16x2xf32>
    %77 = arith.mulf %76, %75 : vector<16x2xf32>
    %78 = vector.extract_strided_slice %72 {offsets = [16, 0], sizes = [16, 2], strides = [1, 1]} : vector<32x2xf32> to vector<16x2xf32>
    %79 = arith.mulf %78, %77 : vector<16x2xf32>
    %80 = vector.broadcast %74 : vector<16x1xf32> to vector<16x2xf32>
    %81 = arith.subf %80, %79 : vector<16x2xf32>
    %82 = tpu.concatenate %77, %81 in 0 : vector<16x2xf32>, vector<16x2xf32> -> vector<32x2xf32>
    %c0_47 = arith.constant 0 : index
    %c0_48 = arith.constant 0 : index
    %83 = vector.load %arg8[%c0_47, %c0_48] : memref<2x32xf32, #tpu.memory_space<vmem>>, vector<2x32xf32>
    %cst_49 = arith.constant dense<0.000000e+00> : vector<32x32xf32>
    %84 = tpu.matmul %82, %83, %cst_49 {dimension_numbers = #tpu.dot_dimension_numbers<[1], [0], [0], [1], [0, 0, 1, 1], [], []>} : vector<32x2xf32>, vector<2x32xf32>, vector<32x32xf32> -> vector<32x32xf32>
    %85 = vector.extract_strided_slice %84 {offsets = [0, 0], sizes = [16, 32], strides = [1, 1]} : vector<32x32xf32> to vector<16x32xf32>
    %86 = arith.mulf %50, %85 : vector<16x32xf32>
    %87 = vector.extract_strided_slice %84 {offsets = [16, 0], sizes = [16, 32], strides = [1, 1]} : vector<32x32xf32> to vector<16x32xf32>
    %88 = arith.addf %86, %87 : vector<16x32xf32>
    %cst_50 = arith.constant 2.000000e+01 : f32
    %89 = vector.broadcast %cst_50 : f32 to vector<16x32xf32>
    %90 = arith.minimumf %88, %89 : vector<16x32xf32>
    %91 = math.exp %90 : vector<16x32xf32>
    %cst_51 = arith.constant 2.000000e+00 : f32
    %92 = vector.broadcast %cst_51 : f32 to vector<16x32xf32>
    %93 = arith.addf %91, %92 : vector<16x32xf32>
    %94 = arith.mulf %91, %93 : vector<16x32xf32>
    %95 = arith.mulf %88, %94 : vector<16x32xf32>
    %cst_52 = arith.constant 2.000000e+00 : f32
    %96 = vector.broadcast %cst_52 : f32 to vector<16x32xf32>
    %97 = arith.addf %94, %96 : vector<16x32xf32>
    %98 = tpu.reciprocal %97 : vector<16x32xf32> -> vector<16x32xf32>
    %99 = arith.mulf %95, %98 : vector<16x32xf32>
    %c0_53 = arith.constant 0 : index
    %c0_54 = arith.constant 0 : index
    %100 = vector.load %arg11[%c0_53, %c0_54] : memref<16x32xf32, #tpu.memory_space<vmem>>, vector<16x32xf32>
    tpu.vector_store %arg11[%c0_53, %c0_54], %99 {strides = array<i32>} : memref<16x32xf32, #tpu.memory_space<vmem>>, vector<16x32xf32>,
    return
  }
  func.func @transform_0(%arg0: i32) -> (i32, i32) {
    %c0_i32 = arith.constant 0 : i32
    %c0_i32_0 = arith.constant 0 : i32
    return %c0_i32, %arg0 : i32, i32
  }
  func.func @transform_1(%arg0: i32) -> (i32, i32, i32) {
    %c0_i32 = arith.constant 0 : i32
    %c0_i32_0 = arith.constant 0 : i32
    %c0_i32_1 = arith.constant 0 : i32
    %c0_i32_2 = arith.constant 0 : i32
    return %c0_i32, %c0_i32_0, %c0_i32_1 : i32, i32, i32
  }
  func.func @transform_2(%arg0: i32) -> (i32, i32) {
    %c0_i32 = arith.constant 0 : i32
    %c0_i32_0 = arith.constant 0 : i32
    %c0_i32_1 = arith.constant 0 : i32
    return %c0_i32, %c0_i32_0 : i32, i32
  }
  func.func @transform_3(%arg0: i32) -> (i32, i32) {
    %c0_i32 = arith.constant 0 : i32
    %c0_i32_0 = arith.constant 0 : i32
    %c0_i32_1 = arith.constant 0 : i32
    return %c0_i32, %c0_i32_0 : i32, i32
  }
  func.func @transform_4(%arg0: i32) -> (i32, i32) {
    %c0_i32 = arith.constant 0 : i32
    %c0_i32_0 = arith.constant 0 : i32
    %c0_i32_1 = arith.constant 0 : i32
    return %c0_i32, %c0_i32_0 : i32, i32
  }
  func.func @transform_5(%arg0: i32) -> (i32, i32, i32) {
    %c0_i32 = arith.constant 0 : i32
    %c0_i32_0 = arith.constant 0 : i32
    %c0_i32_1 = arith.constant 0 : i32
    %c0_i32_2 = arith.constant 0 : i32
    return %c0_i32, %c0_i32_0, %c0_i32_1 : i32, i32, i32
  }
  func.func @transform_6(%arg0: i32) -> (i32, i32) {
    %c0_i32 = arith.constant 0 : i32
    %c0_i32_0 = arith.constant 0 : i32
    %c0_i32_1 = arith.constant 0 : i32
    return %c0_i32, %c0_i32_0 : i32, i32
  }
  func.func @transform_7(%arg0: i32) -> (i32, i32) {
    %c0_i32 = arith.constant 0 : i32
    %c0_i32_0 = arith.constant 0 : i32
    %c0_i32_1 = arith.constant 0 : i32
    return %c0_i32, %c0_i32_0 : i32, i32
  }
  func.func @transform_8(%arg0: i32) -> (i32, i32) {
    %c0_i32 = arith.constant 0 : i32
    %c0_i32_0 = arith.constant 0 : i32
    %c0_i32_1 = arith.constant 0 : i32
    return %c0_i32, %c0_i32_0 : i32, i32
  }
  func.func @transform_9(%arg0: i32) -> (i32, i32) {
    %c0_i32 = arith.constant 0 : i32
    %c0_i32_0 = arith.constant 0 : i32
    %c0_i32_1 = arith.constant 0 : i32
    return %c0_i32, %c0_i32_0 : i32, i32
  }
  func.func @transform_10(%arg0: i32) -> (i32, i32) {
    %c0_i32 = arith.constant 0 : i32
    %c0_i32_0 = arith.constant 0 : i32
    return %c0_i32, %arg0 : i32, i32
  }
}

</mosaic_0001>

<bundles_post_ra>
// kernel: tpu_custom_call.1
= control target key start
LH: loop header
LB: loop body
LE: loop exit
PB: predicated region body
PF: predicated region fallthrough
CT: control target
= control target key end

     0   :  { %s1227_s15 = smov 98   ;;  %s1228_s16 = smov 97   ;;  %vm76_vm0 = vcmask 31744   ;;  %v1231_v3 = vmov 0   ;;  %s1454_s0 = inlined_call_operand.vmem [shape: f32[4,32], index: 0, kind: input, shape index: {}]   ;;  %s1455_s1 = inlined_call_operand.vmem [shape: f32[5,16,4], index: 1, kind: input, shape index: {}]   ;;  %s1456_s2 = inlined_call_operand.vmem [shape: f32[16,1], index: 2, kind: input, shape index: {}]   ;;  %s1457_s3 = inlined_call_operand.vmem [shape: f32[16,1], index: 3, kind: input, shape index: {}]   ;;  %s1458_s4 = inlined_call_operand.vmem [shape: f32[16,1], index: 4, kind: input, shape index: {}]   ;;  %s1459_s5 = inlined_call_operand.vmem [shape: f32[5,1,32], index: 5, kind: input, shape index: {}]   ;;  %s1460_s6 = inlined_call_operand.vmem [shape: f32[32,2], index: 6, kind: input, shape index: {}]   ;;  %s1461_s7 = inlined_call_operand.vmem [shape: f32[2,32], index: 7, kind: input, shape index: {}]   ;;  %s1462_s8 = inlined_call_operand.vmem [shape: f32[16,32], index: 8, kind: input, shape index: {}]   ;;  %s1463_s9 = inlined_call_operand.vmem [shape: f32[32,16], index: 9, kind: input, shape index: {}]   ;;  %s1464_s10 = inlined_call_operand.hbm [shape: f32[16,32], index: 10, kind: output, shape index: {}]  }
   0x1   :  { %v1297_v0 = vld [vmem:[%s1454_s0] sm:$0xf]  ;;  %v1031_v1 = vld [vmem:[%s1455_s1 + $0x10] sm:$0xff]  ;;  %s1229_s0 = smov 2   ;;  %s1230_s21 = smov 1   ;;  %1193 = vset.pattern.permute.xlu0 %v1231_v3  ;;  %1194 = vset.pattern.permute.xlu1 %v1231_v3 }
   0x2   :  { %38 = vrot.lane.b32.xlu1 %v1297_v0, %s1227_s15  ;;  %56 = vrot.lane.b32.xlu0 %v1297_v0, %s1228_s16  ;;  %v54_v2 = vld [vmem:[%s1455_s1] sm:$0xff]  ;;  %s1232_s22 = smov 31   ;;  %s1233_s23 = smov 127  }
   0x3   :  { %1115 = vmatprep.mubr.msk.f32.mxu0 %vm76_vm0, %v1031_v1  ;;  %1120 = vmatprep.mubr.msk.f32.mxu1 %vm76_vm0, %v54_v2 }
   0x6   :  { %41 = vrot.lane.b32.xlu1 %v1297_v0, %s1229_s0  ;;  %59 = vrot.lane.b32.xlu0 %v1297_v0, %s1230_s21 }
   0xa   :  { %337 = vrot.lane.b32.xlu1 %v1297_v0, %s1232_s22  ;;  %334 = vrot.lane.b32.xlu0 %v1297_v0, %s1233_s23 }
   0xb   :  { %15 = vsyncpa [#allocation3], 0  ;;  %s1234_s24 = smov 30   ;;  %s1235_s25 = smov 126   ;;  %v546_v4 = vld [vmem:[%s1456_s2] sm:$0xff]  ;;  %v547_v5 = vld [vmem:[%s1456_s2 + $0x8] sm:$0xff] }
   0xc   :  { %v857_v6 = vld [vmem:[%s1457_s3 + $0x8] sm:$0xff]  ;;  %v856_v7 = vld [vmem:[%s1457_s3] sm:$0xff]  ;;  %vm44_vm1 = vcmask 15360   ;;  %vm62_vm2 = vcmask 7168   ;;  %vm83_vm3 = vcmask 1043456   ;;  %vm340_vm4 = vcmask 252928  }
   0xd   :  { %v859_v8 = vld [vmem:[%s1458_s4 + $0x8] sm:$0xff]  ;;  %v858_v9 = vld [vmem:[%s1458_s4] sm:$0xff]  ;;  %v1032_v21 = vld [vmem:[%s1455_s1 + $0x18] sm:$0xff]  ;;  %vm446_vm5 = vcmask 244736   ;;  %vm566_vm6 = vcmask 261120   ;;  %vm758_vm7 = vcmask 130048  }
   0xe   :  { %443 = vrot.lane.b32.xlu1 %v1297_v0, %s1234_s24  ;;  %440 = vrot.lane.b32.xlu0 %v1297_v0, %s1235_s25  ;;  %v1028_v12 = vld [vmem:[%s1459_s5] ss:$0 sm:$0xff]  ;;  %v1030_v13 = vld [vmem:[%s1459_s5 + $0x1] ss:$0 sm:$0xff]  ;;  %vm899_vm8 = vcmask 1041408  }
   0xf   :  { %v1045_v20 = vld [vmem:[%s1459_s5 + $0x3] ss:$0 sm:$0xff]  ;;  %v55_v22 = vld [vmem:[%s1455_s1 + $0x8] sm:$0xff]  ;;  %v1046_v28 = vld [vmem:[%s1455_s1 + $0x30] sm:$0xff] }
  0x10   :  { %v1039_v25 = vld [vmem:[%s1455_s1 + $0x20] sm:$0xff]  ;;  %v1040_v30 = vld [vmem:[%s1455_s1 + $0x28] sm:$0xff]  ;;  %v1047_v31 = vld [vmem:[%s1455_s1 + $0x38] sm:$0xff] }
  0x11   :  { %v1052_v29 = vld [vmem:[%s1459_s5 + $0x4] ss:$0 sm:$0xff]  ;;  %v1054_v37 = vld [vmem:[%s1455_s1 + $0x48] sm:$0xff]  ;;  %v565_v38 = vld [vmem:[%s1460_s6 + $0x18] sm:$0xff] }
  0x12   :  { %550 = vperm.xlu0 %1193, %v546_v4   ;;  %555 = vperm.xlu1 %1194, %v547_v5   ;;  %v1053_v34 = vld [vmem:[%s1455_s1 + $0x40] sm:$0xff]  ;;  %v564_v39 = vld [vmem:[%s1460_s6 + $0x10] sm:$0xff]  ;;  %v563_v40 = vld [vmem:[%s1460_s6 + $0x8] sm:$0xff] }
  0x13   :  { %v562_v41 = vld [vmem:[%s1460_s6] sm:$0xff] }
  0x14   :  { %v664_v2 = vld [vmem:[%s1462_s8] sm:$0xff] }
  0x16   :  { %867 = vperm.xlu0 %1193, %v857_v6   ;;  %862 = vperm.xlu1 %1194, %v856_v7   ;;  %v665_v7 = vld [vmem:[%s1462_s8 + $0x8] sm:$0xff] }
  0x1a   :  { %881 = vperm.xlu0 %1193, %v859_v8   ;;  %876 = vperm.xlu1 %1194, %v858_v9   ;;  %v754_v8 = vld [vmem:[%s1463_s9] sm:$0xff] }
  0x74   :  { %v39_v10 = vpop.permute.xlu1 %38  ;;  %v57_v11 = vpop.permute.xlu0 %56 }
  0x78   :  { %v42_v14 = vpop.permute.xlu1 %41  ;;  %v60_v15 = vpop.permute.xlu0 %59 }
  0x79   :  { %v45_v16 = vsel %vm44_vm1, %v39_v10, %v42_v14  ;;  %v63_v17 = vsel %vm62_vm2, %v57_v11, %v60_v15 }
  0x7a   :  { %v53_v18 = vmul.f32 %v1028_v12, %v45_v16  ;;  %v72_v19 = vmul.f32 %v1030_v13, %v63_v17 }
  0x7c   :  { %1118 = vmatprep.subr.msk.mxu1 %vm83_vm3, %v53_v18  ;;  %v338_v23 = vpop.permute.xlu1 %337  ;;  %1113 = vmatprep.subr.msk.mxu0 %vm83_vm3, %v72_v19  ;;  %v335_v24 = vpop.permute.xlu0 %334 }
  0x7d   :  { %v341_v26 = vsel %vm340_vm4, %v335_v24, %v338_v23  ;;  %1114 = vmatpush3.msk.msra.mxu0 %vm83_vm3, %v72_v19  ;;  %1119 = vmatpush3.msk.msra.mxu1 %vm83_vm3, %v53_v18  ;;  %v755_v18 = vld [vmem:[%s1463_s9 + $0x8] sm:$0xff]  ;;  %v756_v19 = vld [vmem:[%s1463_s9 + $0x10] sm:$0xff] }
  0x7e   :  { %v350_v27 = vmul.f32 %v1045_v20, %v341_v26  ;;  %1116 = vmatmul.mubr.msk.f32.vlgmr.msra.gmra.mxu0 %vm76_vm0, %v1032_v21  ;;  %1121 = vmatmul.mubr.msk.f32.vlgmr.msra.gmra.mxu1 %vm76_vm0, %v55_v22  ;;  %v757_v20 = vld [vmem:[%s1463_s9 + $0x18] sm:$0xff]  ;;  %v886_v21 = vld [vmem:[%s1461_s7] sm:$0x3]  ;;  %s1236_s7 = smov [#allocation2]  }
  0x7f   :  { %1123 = vmatprep.subr.msk.mxu0 %vm83_vm3, %v1297_v0  ;;  %1125 = vmatprep.mubr.msk.f32.mxu0 %vm76_vm0, %v1039_v25  ;;  %s1017_s9 = sshll.u32 %s1236_s7, 4  ;;  %s1018_s9 = int_to_ptr.vmem [resolvable:$true] %s1017_s9 }
  0x80   :  { %v444_v32 = vpop.permute.xlu1 %443  ;;  %1128 = vmatprep.subr.msk.mxu1 %vm83_vm3, %v350_v27  ;;  %v441_v33 = vpop.permute.xlu0 %440  ;;  %1124 = vmatpush3.msk.msra.mxu0 %vm83_vm3, %v1297_v0  ;;  %s1205_s12 = scalar_lea.vmem %s1018_s9, 256  ;;  %p1210_p1 = scmp.lt.s32.totalorder %s1018_s9, %s1018_s9 }
  0x81   :  { %v447_v35 = vsel %vm446_vm5, %v441_v33, %v444_v32  ;;  %1129 = vmatpush3.msk.msra.mxu1 %vm83_vm3, %v350_v27  ;;  %1130 = vmatprep.mubr.msk.f32.mxu1 %vm76_vm0, %v1046_v28  ;;  %p1206_p0 = scmp.ne.s32.totalorder %s1018_s9, %s1205_s12  ;;  %p1211_p2 = scmp.lt.s32.totalorder %s1205_s12, %s1205_s12 }
  0x82   :  { %v456_v36 = vmul.f32 %v1052_v29, %v447_v35  ;;  %1126 = vmatmul.mubr.msk.f32.vlgmr.msra.gmra.mxu0 %vm76_vm0, %v1040_v30  ;;  %1131 = vmatmul.mubr.msk.f32.vlgmr.msra.gmra.mxu1 %vm76_vm0, %v1047_v31 }
  0x83   :  { %1135 = vmatprep.mubr.msk.f32.mxu0 %vm76_vm0, %v1053_v34  ;;  %1138 = vmatprep.subr.mxu1 %v565_v38  ;;  %p1212_p3 = por %p1211_p2, %p1210_p1 }
  0x84   :  { %1133 = vmatprep.subr.msk.mxu0 %vm83_vm3, %v456_v36  ;;  %1139 = vmatpush3.msra.mxu1 %v565_v38 }
  0x85   :  { %1134 = vmatpush3.msk.msra.mxu0 %vm83_vm3, %v456_v36  ;;  %1140 = vmatprep.subr.mxu1 %v564_v39  ;;  %p1213_p4 = pnand %p1212_p3, %p1206_p0 }
  0x86   :  { %1136 = vmatmul.mubr.msk.f32.vlgmr.msra.gmra.mxu0 %vm76_vm0, %v1054_v37  ;;  %1141 = vmatpush3.msra.mxu1 %v564_v39 }
  0x87   :  { %1142 = vmatprep.subr.mxu1 %v563_v40  ;;  %1160 = vmatprep.mubr.msk.f32.mxu0 %vm566_vm6, %v664_v2 }
  0x88   :  { %1143 = vmatpush3.msra.mxu1 %v563_v40 }
  0x89   :  { %1144 = vmatprep.subr.mxu1 %v562_v41 }
  0x8a   :  { %1145 = vmatpush3.msra.mxu1 %v562_v41 }
  0x8b   :  { %1173 = vmatprep.subr.msk.mxu1 %vm899_vm8, %v886_v21 }
  0x8d   :  { %v551_v60 = vpop.permute.xlu0 %550  ;;  %v556_v61 = vpop.permute.xlu1 %555 }
  0x91   :  { %v863_v23 = vpop.permute.xlu1 %862  ;;  %v868_v25 = vpop.permute.xlu0 %867 }
  0x95   :  { %v877_v32 = vpop.permute.xlu1 %876  ;;  %v882_v33 = vpop.permute.xlu0 %881 }
 0x13e   :  { %v1117_v42 = vpop.f32.mrf.mxu0  ;;  %v1122_v43 = vpop.f32.mrf.mxu1 }
 0x13f   :  { %v243_v46 = vadd.f32 %v1122_v43, %v1117_v42 }
 0x140   :  { %v153_v44 = vpop.f32.mrf.mxu0  ;;  %v237_v45 = vpop.f32.mrf.mxu1 }
 0x141   :  { %v238_v49 = vadd.f32 %v237_v45, %v153_v44 }
 0x142   :  { %v1127_v47 = vpop.f32.mrf.mxu0  ;;  %v1132_v48 = vpop.f32.mrf.mxu1 }
 0x143   :  { %v333_v50 = vadd.f32 %v1127_v47, %v243_v46 }
 0x144   :  { %v323_v51 = vpop.f32.mrf.mxu0  ;;  %v429_v54 = vpop.f32.mrf.mxu1 }
 0x145   :  { %v332_v52 = vadd.f32 %v323_v51, %v238_v49  ;;  %v439_v53 = vadd.f32 %v1132_v48, %v333_v50 }
 0x146   :  { %v1137_v55 = vpop.f32.mrf.mxu0 }
 0x147   :  { %v438_v56 = vadd.f32 %v429_v54, %v332_v52  ;;  %v545_v57 = vadd.f32 %v1137_v55, %v439_v53 }
 0x148   :  { %v535_v58 = vpop.f32.mrf.mxu0 }
 0x149   :  { %v544_v59 = vadd.f32 %v535_v58, %v438_v56  ;;  %v1404_v63 = vadd.f32 %v556_v61, %v545_v57 }
 0x14b   :  { %v1402_v62 = vadd.f32 %v551_v60, %v544_v59  ;;  %v561_v1 = vmul.f32 %v1404_v63, %v1404_v63 }
 0x14d   :  { %v560_v0 = vmul.f32 %v1402_v62, %v1402_v62  ;;  %1146 = vmatprep.mubr.msk.f32.mxu1 %vm566_vm6, %v1402_v62 }
 0x14e   :  { %1147 = vmatmul.mubr.msk.f32.vlgmr.msra.gmra.mxu1 %vm566_vm6, %v1404_v63 }
 0x14f   :  { %1149 = vmatprep.mubr.msk.f32.mxu1 %vm566_vm6, %v560_v0  ;;  %1174 = vmatpush3.msk.msra.mxu1 %vm899_vm8, %v886_v21 }
 0x152   :  { %1150 = vmatmul.mubr.msk.f32.gmra.mxu1 %vm566_vm6, %v561_v1 }
 0x20e   :  { %v1148_v3 = vpop.f32.mrf.mxu1 }
 0x210   :  { %v645_v4 = vpop.f32.mrf.mxu1 }
 0x212   :  { %v1151_v5 = vpop.f32.mrf.mxu1 }
 0x213   :  { %1152 = vmatprep.subr.mxu0 %v1151_v5 }
 0x214   :  { %v655_v6 = vpop.f32.mrf.mxu1  ;;  %1153 = vmatpush3.msra.mxu0 %v1151_v5 }
 0x215   :  { %1154 = vmatprep.subr.mxu0 %v655_v6 }
 0x216   :  { %1155 = vmatpush3.msra.mxu0 %v655_v6 }
 0x217   :  { %1156 = vmatprep.subr.mxu0 %v1148_v3 }
 0x218   :  { %1157 = vmatpush3.msra.mxu0 %v1148_v3 }
 0x219   :  { %1158 = vmatprep.subr.mxu0 %v645_v4 }
 0x21a   :  { %1159 = vmatpush3.msra.mxu0 %v645_v4 }
 0x21b   :  { %1161 = vmatmul.mubr.msk.f32.vlgmr.msra.gmra.mxu0 %vm566_vm6, %v665_v7 }
 0x21c   :  { %1167 = vmatprep.mubr.msk.f32.mxu0 %vm758_vm7, %v754_v8 }
 0x2db   :  { %v1162_v9 = vpop.f32.mrf.mxu0 }
 0x2dc   :  { %v748_v12 = vmul.f32 0.03125, %v1162_v9 }
 0x2dd   :  { %v738_v10 = vpop.f32.mrf.mxu0 }
 0x2de   :  { %v747_v11 = vmul.f32 0.03125, %v738_v10 }
 0x2e0   :  { %v749_v13 = vmul.f32 %v747_v11, %v747_v11  ;;  %1163 = vmatprep.subr.mxu0 %v747_v11 }
 0x2e1   :  { %1164 = vmatpush3.msra.mxu0 %v747_v11 }
 0x2e2   :  { %v750_v14 = vsub.f32 %v748_v12, %v749_v13 }
 0x2e4   :  { %v751_v15 = vmax.f32 %v750_v14, 0.0 }
 0x2e6   :  { %v752_v16 = vadd.f32 1e-05, %v751_v15 }
 0x2e8   :  { %1195 = vrsqrt.f32 %v752_v16 }
 0x2f5   :  { %v1196_v17 = vpop.eup %1195 }
 0x2f6   :  { %1165 = vmatprep.subr.mxu0 %v1196_v17 }
 0x2f7   :  { %1166 = vmatpush3.msra.mxu0 %v1196_v17 }
 0x2f8   :  { %1168 = vmatmul.mubr.msk.f32.vlgmr.msra.gmra.mxu0 %vm758_vm7, %v755_v18 }
 0x2f9   :  { %1170 = vmatprep.mubr.msk.f32.mxu0 %vm758_vm7, %v756_v19 }
 0x2fc   :  { %1171 = vmatmul.mubr.msk.f32.gmra.mxu0 %vm758_vm7, %v757_v20 }
 0x3b8   :  { %v1169_v22 = vpop.f32.mrf.mxu0 }
 0x3b9   :  { %v871_v27 = vmul.f32 %v1169_v22, %v868_v25 }
 0x3ba   :  { %v837_v24 = vpop.f32.mrf.mxu0 }
 0x3bb   :  { %v870_v26 = vmul.f32 %v863_v23, %v837_v24 }
 0x3bc   :  { %v1172_v28 = vpop.f32.mrf.mxu0 }
 0x3bd   :  { %1175 = vmatprep.mubr.msk.f32.mxu1 %vm44_vm1, %v870_v26  ;;  %v873_v29 = vmul.f32 %v1172_v28, %v871_v27 }
 0x3be   :  { %v847_v30 = vpop.f32.mrf.mxu0  ;;  %1176 = vmatmul.mubr.msk.f32.vlgmr.msra.gmra.mxu1 %vm44_vm1, %v871_v27 }
 0x3bf   :  { %v872_v31 = vmul.f32 %v870_v26, %v847_v30  ;;  %v885_v35 = vsub.f32 %v882_v33, %v873_v29 }
 0x3c1   :  { %v884_v34 = vsub.f32 %v877_v32, %v872_v31 }
 0x3c3   :  { %1178 = vmatprep.mubr.msk.f32.mxu1 %vm44_vm1, %v884_v34 }
 0x3c4   :  { %1179 = vmatmul.mubr.msk.f32.gmra.mxu1 %vm44_vm1, %v885_v35 }
 0x47e   :  { %v1177_v36 = vpop.f32.mrf.mxu1 }
 0x47f   :  { %v989_v38 = vmul.f32 %v1177_v36, %v1404_v63 }
 0x480   :  { %v969_v37 = vpop.f32.mrf.mxu1 }
 0x481   :  { %v988_v40 = vmul.f32 %v969_v37, %v1402_v62 }
 0x484   :  { %v1180_v39 = vpop.f32.mrf.mxu1 }
 0x485   :  { %v991_v41 = vadd.f32 %v1180_v39, %v989_v38 }
 0x486   :  { %v979_v42 = vpop.f32.mrf.mxu1 }
 0x487   :  { %v993_v43 = vmin.f32 %v991_v41, 20.0  ;;  %v990_v44 = vadd.f32 %v988_v40, %v979_v42 }
 0x489   :  { %v996_v45 = vmul.f32 1.442695, %v993_v43  ;;  %v992_v46 = vmin.f32 %v990_v44, 20.0 }
 0x48b   :  { %1197 = vpow2.f32 %v996_v45  ;;  %v994_v47 = vmul.f32 1.442695, %v992_v46 }
 0x48d   :  { %1199 = vpow2.f32 %v994_v47 }
 0x498   :  { %v1198_v48 = vpop.eup %1197 }
 0x499   :  { %v999_v49 = vadd.f32 2.0, %v1198_v48 }
 0x49a   :  { %v1200_v50 = vpop.eup %1199 }
 0x49b   :  { %v1001_v51 = vmul.f32 %v1198_v48, %v999_v49  ;;  %v998_v52 = vadd.f32 2.0, %v1200_v50 }
 0x49d   :  { %v1005_v53 = vadd.f32 2.0, %v1001_v51  ;;  %v1000_v54 = vmul.f32 %v1200_v50, %v998_v52  ;;  %v1003_v56 = vmul.f32 %v1001_v51, %v991_v41 }
 0x49f   :  { %1201 = vrcp.f32 %v1005_v53  ;;  %v1004_v55 = vadd.f32 2.0, %v1000_v54  ;;  %v1002_v59 = vmul.f32 %v1000_v54, %v990_v44 }
 0x4a1   :  { %1203 = vrcp.f32 %v1004_v55 }
 0x4ac   :  { %v1202_v57 = vpop.eup %1201 }
 0x4ad   :  { %v1009_v58 = vmul.f32 %v1202_v57, %v1003_v56 }
 0x4ae   :  { %v1204_v60 = vpop.eup %1203 }
 0x4af   :  { %1011 = vst.msk [vmem:[#allocation2 + $0x8] sm:$0xff] %vm566_vm6, %v1009_v58  ;;  %v1008_v61 = vmul.f32 %v1204_v60, %v1002_v59 }
 0x4b1   :  { %1010 = vst.msk [vmem:[#allocation2] sm:$0xff] %vm566_vm6, %v1008_v61 }
 0x4b2   :  { %1216 = shalt.err (!%p1213_p4)
}
 0x4b3   :  { %s1237_s13 = smov 128   ;;  %s1238_s14 = smov 8  }
 0x4b4   :  { %1023 = dma.vmem_to_hbm [thread:$0]  %s1018_s9, 256, %s1464_s10, [#allocation3], %s1237_s13, %s1237_s13, %s1238_s14  }
 0x4b5   :  { %1225 = dma.done.wait [#allocation3], 256  }
 0x4b6   :  { %1226 = vsyncadd [#allocation3], 4294967040 }
 0x4b7   :  { %1027 = vsyncpa [#allocation3], 1 }

</bundles_post_ra>
